<compile_context>
chip_gen: v6e
topology: v6e:2x2x1
jax: 0.10.0
libtpu: 0.0.40
codegen_flags: <defaults>
</compile_context>

<pallas_src>
import jax
import jax.numpy as jnp
from jax import lax
from jax.experimental import pallas as pl
from jax.experimental.pallas import tpu as pltpu

INPUT_SIZE = 28 * 28          # 784
HIDDEN_SIZE = 16


def _round_up(n, m):
    return ((n + m - 1) // m) * m


def _autoencoder_kernel(x_ref, w1_ref, b1_ref, w2_ref, b2_ref, out_ref):
    # x_ref:  (TB, 784)            (f32 or bf16)
    # w1_ref: (16, 784)  torch layout          b1_ref: (1, 16)
    # w2_ref: (16, 784)  torch W2 transposed   b2_ref: (1, 784)
    x = x_ref[...].astype(jnp.float32)

    # Encoder: x @ W1.T  -> contract x dim 1 with W1 dim 1 (no transposed
    # weight copy materialized; MXU handles the NT matmul).
    h = lax.dot_general(
        x, w1_ref[...],
        dimension_numbers=(((1,), (1,)), ((), ())),
        preferred_element_type=jnp.float32,
    )
    h = jax.nn.sigmoid(h + b1_ref[...])

    # Decoder: h @ W2.T  (W2.T pre-laid-out as (16, 784)).
    y = jnp.dot(h, w2_ref[...], preferred_element_type=jnp.float32)
    y = jax.nn.sigmoid(y + b2_ref[...])

    out_ref[...] = y.astype(out_ref.dtype)


def autoencoder_forward(x, w1, b1, w2, b2, *, batch_tile=None):
    """Forward pass of the MNIST Autoencoder.

    x:  (B, 784), float32 or bfloat16 (output dtype matches x).
    w1: (16, 784)  torch nn.Linear(784, 16).weight layout
    b1: (16,)      or (1, 16)
    w2: (784, 16)  torch nn.Linear(16, 784).weight layout
    b2: (784,)     or (1, 784)
    """
    B, D = x.shape
    assert D == INPUT_SIZE
    assert w1.shape == (HIDDEN_SIZE, INPUT_SIZE)
    assert w2.shape == (INPUT_SIZE, HIDDEN_SIZE)

    out_dtype = x.dtype
    itemsize_in = jnp.dtype(x.dtype).itemsize
    itemsize_out = jnp.dtype(out_dtype).itemsize
    # Sublane packing: 8 rows for 32-bit, 16 for 16-bit dtypes.
    sub = 8 * (4 // max(1, itemsize_in))

    if batch_tile is None:
        # Aim for ~8 grid steps (DMA/compute pipelining + v7x megacore),
        # with 256-1024 row tiles, never larger than the (rounded) batch.
        t = _round_up(pl.cdiv(B, 8), sub)
        t = max(t, 256)
        t = min(t, 1024)
        t = min(t, _round_up(B, sub))
        batch_tile = t
    else:
        batch_tile = max(sub, _round_up(batch_tile, sub))

    grid = (pl.cdiv(B, batch_tile),)   # ragged edge block handled by Pallas

    # Parameters in lane-dense (16, 784) layouts; biases as (1, N) rows.
    w1_p = w1.astype(jnp.float32)
    w2_t = jnp.transpose(w2).astype(jnp.float32)          # (16, 784), ~50 KB
    b1_p = jnp.asarray(b1, jnp.float32).reshape(1, HIDDEN_SIZE)
    b2_p = jnp.asarray(b2, jnp.float32).reshape(1, INPUT_SIZE)

    # Generation-aware VMEM budget: double-buffered in/out tiles (lane-padded
    # to 896) + resident params + headroom, capped at 3/4 of physical VMEM
    # (~48 MiB on v7x, ~96 MiB on v5e/v6e).
    lanes_pad = _round_up(INPUT_SIZE, 128)
    tile_in_bytes = batch_tile * lanes_pad * itemsize_in
    tile_out_bytes = batch_tile * lanes_pad * itemsize_out
    param_bytes = 4 * (2 * HIDDEN_SIZE * lanes_pad + HIDDEN_SIZE + lanes_pad)
    try:
        vmem_cap = int(pltpu.get_tpu_info().vmem_capacity_bytes)
    except Exception:
        vmem_cap = 64 << 20   # conservative (v7x per-TC)
    cap = (3 * vmem_cap) // 4
    need = 2 * (tile_in_bytes + tile_out_bytes) + 2 * param_bytes + (4 << 20)
    vmem_limit = int(min(cap, max(need, 32 << 20)))

    cost = pl.CostEstimate(
        flops=4 * B * INPUT_SIZE * HIDDEN_SIZE,             # two matmuls
        transcendentals=B * (INPUT_SIZE + HIDDEN_SIZE),     # sigmoids
        bytes_accessed=B * INPUT_SIZE * (itemsize_in + itemsize_out)
        + 4 * (2 * HIDDEN_SIZE * INPUT_SIZE + HIDDEN_SIZE + INPUT_SIZE),
    )

    return pl.pallas_call(
        _autoencoder_kernel,
        out_shape=jax.ShapeDtypeStruct((B, INPUT_SIZE), out_dtype),
        grid_spec=pltpu.PrefetchScalarGridSpec(
            num_scalar_prefetch=0,
            grid=grid,
            in_specs=[
                # batch-tiled activations; last block dim == full array dim 784
                pl.BlockSpec((batch_tile, INPUT_SIZE), lambda i: (i, 0)),
                # parameters: full blocks, resident across the grid
                pl.BlockSpec((HIDDEN_SIZE, INPUT_SIZE), lambda i: (0, 0)),
                pl.BlockSpec((1, HIDDEN_SIZE), lambda i: (0, 0)),
                pl.BlockSpec((HIDDEN_SIZE, INPUT_SIZE), lambda i: (0, 0)),
                pl.BlockSpec((1, INPUT_SIZE), lambda i: (0, 0)),
            ],
            out_specs=pl.BlockSpec((batch_tile, INPUT_SIZE), lambda i: (i, 0)),
        ),
        compiler_params=pltpu.CompilerParams(
            dimension_semantics=("parallel",),   # shards across v7x's 2 TCs
            vmem_limit_bytes=vmem_limit,
        ),
        cost_estimate=cost,
    )(x, w1_p, b1_p, w2_t, b2_p)


def init_params(key):
    """Torch-layout params matching nn.Linear default init (U(+/- 1/sqrt(fan_in)))."""
    k1, k2, k3, k4 = jax.random.split(key, 4)
    bound1 = 1.0 / (INPUT_SIZE ** 0.5)
    bound2 = 1.0 / (HIDDEN_SIZE ** 0.5)
    w1 = jax.random.uniform(k1, (HIDDEN_SIZE, INPUT_SIZE), jnp.float32,
                            minval=-bound1, maxval=bound1)
    b1 = jax.random.uniform(k2, (HIDDEN_SIZE,), jnp.float32,
                            minval=-bound1, maxval=bound1)
    w2 = jax.random.uniform(k3, (INPUT_SIZE, HIDDEN_SIZE), jnp.float32,
                            minval=-bound2, maxval=bound2)
    b2 = jax.random.uniform(k4, (INPUT_SIZE,), jnp.float32,
                            minval=-bound2, maxval=bound2)
    return w1, b1, w2, b2


def reference_forward(x, w1, b1, w2, b2):
    h = jax.nn.sigmoid(x @ w1.T + b1)
    return jax.nn.sigmoid(h @ w2.T + b2)


if __name__ == "__main__":
    key = jax.random.PRNGKey(0)
    kx, kp = jax.random.split(key)
    w1, b1, w2, b2 = init_params(kp)

    # Small batch (multiple of the sublane count).
    B = 8
    x = jax.random.uniform(kx, (B, INPUT_SIZE), jnp.float32)
    out = jax.block_until_ready(autoencoder_forward(x, w1, b1, w2, b2))
    ref = reference_forward(x, w1, b1, w2, b2)
    assert out.shape == (B, INPUT_SIZE)
    assert jnp.allclose(out, ref, atol=1e-5, rtol=1e-5)

    # Ragged batch exercises the clipped edge-block path (no pad/slice copies).
    B2 = 13
    x2 = jax.random.uniform(kx, (B2, INPUT_SIZE), jnp.float32)
    out2 = jax.block_until_ready(autoencoder_forward(x2, w1, b1, w2, b2))
    ref2 = reference_forward(x2, w1, b1, w2, b2)
    assert out2.shape == (B2, INPUT_SIZE)
    assert jnp.allclose(out2, ref2, atol=1e-5, rtol=1e-5)

    # bf16 I/O path: halves activation HBM traffic (compute stays f32).
    B3 = 64
    x3 = jax.random.uniform(kx, (B3, INPUT_SIZE), jnp.float32)
    out3 = jax.block_until_ready(
        autoencoder_forward(x3.astype(jnp.bfloat16), w1, b1, w2, b2))
    ref3 = reference_forward(x3, w1, b1, w2, b2)
    assert out3.shape == (B3, INPUT_SIZE) and out3.dtype == jnp.bfloat16
    assert jnp.allclose(out3.astype(jnp.float32), ref3, atol=5e-2)

    print("KERNEL_OK")
</pallas_src>

<mosaic_0001>
module attributes {stable_mosaic.version = 11 : i64} {
  func.func @_autoencoder_kernel(%arg0: i32, %arg1: memref<8x784xf32, #tpu.memory_space<vmem>>, %arg2: memref<16x784xf32, #tpu.memory_space<vmem>>, %arg3: memref<1x16xf32, #tpu.memory_space<vmem>>, %arg4: memref<16x784xf32, #tpu.memory_space<vmem>>, %arg5: memref<1x784xf32, #tpu.memory_space<vmem>>, %arg6: memref<8x784xf32, #tpu.memory_space<vmem>>) attributes {dimension_semantics = [#tpu.dimension_semantics<parallel>], iteration_bounds = array<i64: 1>, scalar_prefetch = 0 : i64, scratch_operands = 0 : i64, tpu.core_type = #tpu.core_type<tc>, window_params = [{transform_indices = @transform_0, window_bounds = array<i64: 8, 784>}, {pipeline_mode = #tpu.pipeline_mode<synchronous>, transform_indices = @transform_1, window_bounds = array<i64: 16, 784>}, {pipeline_mode = #tpu.pipeline_mode<synchronous>, transform_indices = @transform_2, window_bounds = array<i64: 1, 16>}, {pipeline_mode = #tpu.pipeline_mode<synchronous>, transform_indices = @transform_3, window_bounds = array<i64: 16, 784>}, {pipeline_mode = #tpu.pipeline_mode<synchronous>, transform_indices = @transform_4, window_bounds = array<i64: 1, 784>}, {transform_indices = @transform_5, window_bounds = array<i64: 8, 784>}]} {
    %c0 = arith.constant 0 : index
    %c0_0 = arith.constant 0 : index
    %0 = vector.load %arg1[%c0, %c0_0] : memref<8x784xf32, #tpu.memory_space<vmem>>, vector<8x784xf32>
    %c0_1 = arith.constant 0 : index
    %c0_2 = arith.constant 0 : index
    %1 = vector.load %arg2[%c0_1, %c0_2] : memref<16x784xf32, #tpu.memory_space<vmem>>, vector<16x784xf32>
    %cst = arith.constant dense<0.000000e+00> : vector<8x16xf32>
    %2 = tpu.matmul %0, %1, %cst {dimension_numbers = #tpu.dot_dimension_numbers<[1], [1], [0], [0], [0, 0, 1, 0], [], []>} : vector<8x784xf32>, vector<16x784xf32>, vector<8x16xf32> -> vector<8x16xf32>
    %c0_3 = arith.constant 0 : index
    %c0_4 = arith.constant 0 : index
    %3 = vector.load %arg3[%c0_3, %c0_4] : memref<1x16xf32, #tpu.memory_space<vmem>>, vector<1x16xf32>
    %4 = vector.broadcast %3 : vector<1x16xf32> to vector<8x16xf32>
    %5 = arith.addf %2, %4 : vector<8x16xf32>
    %6 = arith.negf %5 : vector<8x16xf32>
    %7 = math.exp %6 : vector<8x16xf32>
    %cst_5 = arith.constant 1.000000e+00 : f32
    %8 = vector.broadcast %cst_5 : f32 to vector<8x16xf32>
    %9 = arith.addf %8, %7 : vector<8x16xf32>
    %10 = arith.divf %8, %9 : vector<8x16xf32>
    %c0_6 = arith.constant 0 : index
    %c0_7 = arith.constant 0 : index
    %11 = vector.load %arg4[%c0_6, %c0_7] : memref<16x784xf32, #tpu.memory_space<vmem>>, vector<16x784xf32>
    %cst_8 = arith.constant dense<0.000000e+00> : vector<8x784xf32>
    %12 = tpu.matmul %10, %11, %cst_8 {dimension_numbers = #tpu.dot_dimension_numbers<[1], [0], [0], [1], [0, 0, 1, 1], [], []>} : vector<8x16xf32>, vector<16x784xf32>, vector<8x784xf32> -> vector<8x784xf32>
    %c0_9 = arith.constant 0 : index
    %c0_10 = arith.constant 0 : index
    %13 = vector.load %arg5[%c0_9, %c0_10] : memref<1x784xf32, #tpu.memory_space<vmem>>, vector<1x784xf32>
    %14 = vector.broadcast %13 : vector<1x784xf32> to vector<8x784xf32>
    %15 = arith.addf %12, %14 : vector<8x784xf32>
    %16 = arith.negf %15 : vector<8x784xf32>
    %17 = math.exp %16 : vector<8x784xf32>
    %cst_11 = arith.constant 1.000000e+00 : f32
    %18 = vector.broadcast %cst_11 : f32 to vector<8x784xf32>
    %19 = arith.addf %18, %17 : vector<8x784xf32>
    %20 = arith.divf %18, %19 : vector<8x784xf32>
    %c0_12 = arith.constant 0 : index
    %c0_13 = arith.constant 0 : index
    %21 = vector.load %arg6[%c0_12, %c0_13] : memref<8x784xf32, #tpu.memory_space<vmem>>, vector<8x784xf32>
    tpu.vector_store %arg6[%c0_12, %c0_13], %20 {strides = array<i32>} : memref<8x784xf32, #tpu.memory_space<vmem>>, vector<8x784xf32>,
    return
  }
  func.func @transform_0(%arg0: i32) -> (i32, i32) {
    %c0_i32 = arith.constant 0 : i32
    %c0_i32_0 = arith.constant 0 : i32
    return %arg0, %c0_i32 : i32, i32
  }
  func.func @transform_1(%arg0: i32) -> (i32, i32) {
    %c0_i32 = arith.constant 0 : i32
    %c0_i32_0 = arith.constant 0 : i32
    %c0_i32_1 = arith.constant 0 : i32
    return %c0_i32, %c0_i32_0 : i32, i32
  }
  func.func @transform_2(%arg0: i32) -> (i32, i32) {
    %c0_i32 = arith.constant 0 : i32
    %c0_i32_0 = arith.constant 0 : i32
    %c0_i32_1 = arith.constant 0 : i32
    return %c0_i32, %c0_i32_0 : i32, i32
  }
  func.func @transform_3(%arg0: i32) -> (i32, i32) {
    %c0_i32 = arith.constant 0 : i32
    %c0_i32_0 = arith.constant 0 : i32
    %c0_i32_1 = arith.constant 0 : i32
    return %c0_i32, %c0_i32_0 : i32, i32
  }
  func.func @transform_4(%arg0: i32) -> (i32, i32) {
    %c0_i32 = arith.constant 0 : i32
    %c0_i32_0 = arith.constant 0 : i32
    %c0_i32_1 = arith.constant 0 : i32
    return %c0_i32, %c0_i32_0 : i32, i32
  }
  func.func @transform_5(%arg0: i32) -> (i32, i32) {
    %c0_i32 = arith.constant 0 : i32
    %c0_i32_0 = arith.constant 0 : i32
    return %arg0, %c0_i32 : i32, i32
  }
}

</mosaic_0001>

<bundles_post_ra>
// kernel: tpu_custom_call.1
= control target key start
LH: loop header
LB: loop body
LE: loop exit
PB: predicated region body
PF: predicated region fallthrough
CT: control target
= control target key end

     0   :  { %10 = vsyncpa [#allocation3], 0  ;;  %s1066_s0 = inlined_call_operand.hbm [shape: f32[8,784], index: 0, kind: input, shape index: {}]   ;;  %s1067_s1 = inlined_call_operand.hbm [shape: f32[16,784], index: 1, kind: input, shape index: {}]   ;;  %s1068_s2 = inlined_call_operand.hbm [shape: f32[1,16], index: 2, kind: input, shape index: {}]   ;;  %s1069_s3 = inlined_call_operand.hbm [shape: f32[16,784], index: 3, kind: input, shape index: {}]   ;;  %s1070_s4 = inlined_call_operand.vmem [shape: f32[1,784], index: 4, kind: input, shape index: {}]   ;;  %s1071_s5 = inlined_call_operand.hbm [shape: f32[8,784], index: 5, kind: output, shape index: {}]  }
   0x1   :  { %11 = vsyncpa [#allocation6], 0 }
   0x2   :  { %12 = vsyncpa [#allocation9], 0 }
   0x3   :  { %13 = vsyncpa [#allocation4], 0  ;;  %s984_s18 = smov [#allocation5]  }
   0x4   :  { %s29_s19 = sshll.u32 %s984_s18, 4  ;;  %s30_s19 = int_to_ptr.vmem [resolvable:$true] %s29_s19 }
   0x5   :  { %s884_s20 = scalar_lea.vmem %s30_s19, 1792  ;;  %p889_p1 = scmp.lt.s32.totalorder %s30_s19, %s30_s19 }
   0x6   :  { %p885_p0 = scmp.ne.s32.totalorder %s30_s19, %s884_s20  ;;  %p890_p2 = scmp.lt.s32.totalorder %s884_s20, %s884_s20 }
   0x8   :  { %p891_p3 = por %p890_p2, %p889_p1 }
   0xa   :  { %p892_p4 = pnand %p891_p3, %p885_p0 }
   0xc   :  { %895 = shalt.err (!%p892_p4)
}
   0xd   :  { %s985_s21 = smov 896   ;;  %s986_s22 = smov 56  }
   0xe   :  { %35 = dma.hbm_to_vmem [thread:$0]  %s1067_s1, 1792, %s30_s19, [#allocation6], %s985_s21, %s985_s21, %s986_s22  }
   0xf   :  { %s987_s25 = smov [#allocation2]   ;;  %s988_s27 = smov [#allocation7]  }
  0x10   :  { %s20_s26 = sshll.u32 %s987_s25, 4  ;;  %s42_s28 = sshll.u32 %s988_s27, 4  ;;  %s21_s26 = int_to_ptr.vmem [resolvable:$true] %s20_s26  ;;  %s43_s28 = int_to_ptr.vmem [resolvable:$true] %s42_s28 }
  0x11   :  { %s904_s29 = scalar_lea.vmem %s21_s26, 896  ;;  %p909_p6 = scmp.lt.s32.totalorder %s21_s26, %s21_s26 }
  0x12   :  { %p905_p5 = scmp.ne.s32.totalorder %s21_s26, %s904_s29  ;;  %p910_p7 = scmp.lt.s32.totalorder %s904_s29, %s904_s29 }
  0x14   :  { %p911_p8 = por %p910_p7, %p909_p6 }
  0x16   :  { %p912_p9 = pnand %p911_p8, %p905_p5 }
  0x18   :  { %915 = shalt.err (!%p912_p9)
}
  0x19   :  { %23 = dma.hbm_to_vmem [thread:$0]  %s1066_s0, 896, %s21_s26, [#allocation3]  }
  0x1a   :  { %s924_s7 = scalar_lea.vmem %s43_s28, 16  ;;  %s928_s1 = scalar_lea.vmem %s43_s28, 32 }
  0x1b   :  { %p925_p10 = scmp.ne.s32.totalorder %s43_s28, %s924_s7  ;;  %p929_p11 = scmp.lt.s32.totalorder %s43_s28, %s43_s28 }
  0x1c   :  { %p930_p12 = scmp.lt.s32.totalorder %s928_s1, %s924_s7 }
  0x1e   :  { %p931_p13 = por %p930_p12, %p929_p11 }
  0x20   :  { %p932_p0 = pnand %p931_p13, %p925_p10 }
  0x22   :  { %935 = shalt.err (!%p932_p0)
}
  0x23   :  { %45 = dma.hbm_to_vmem [thread:$0]  %s1068_s2, 16, %s43_s28, [#allocation6]  }
  0x24   :  { %s989_s10 = smov [#allocation8]  }
  0x25   :  { %s51_s11 = sshll.u32 %s989_s10, 4  ;;  %s52_s11 = int_to_ptr.vmem [resolvable:$true] %s51_s11 }
  0x26   :  { %s944_s12 = scalar_lea.vmem %s52_s11, 1792  ;;  %p949_p2 = scmp.lt.s32.totalorder %s52_s11, %s52_s11 }
  0x27   :  { %p945_p1 = scmp.ne.s32.totalorder %s52_s11, %s944_s12  ;;  %p950_p3 = scmp.lt.s32.totalorder %s944_s12, %s944_s12 }
  0x29   :  { %p951_p4 = por %p950_p3, %p949_p2 }
  0x2b   :  { %p952_p5 = pnand %p951_p4, %p945_p1 }
  0x2d   :  { %955 = shalt.err (!%p952_p5)
}
  0x2e   :  { %57 = dma.hbm_to_vmem [thread:$0]  %s1069_s3, 1792, %s52_s11, [#allocation9], %s985_s21, %s985_s21, %s986_s22  }
  0x2f   :  { %976 = dma.done.wait [#allocation3], 896  }
  0x30   :  { %977 = vsyncadd [#allocation3], 4294966400 }
  0x31   :  { %978 = dma.done.wait [#allocation6], 1808  }
  0x32   :  { %979 = vsyncadd [#allocation6], 4294965488 }
  0x33   :  { %980 = dma.done.wait [#allocation9], 1792  }
  0x34   :  { %981 = vsyncadd [#allocation9], 4294965504  ;;  %v87_v0 = vld [vmem:[#allocation5 + $0x40] sm:$0xff]  ;;  %v89_v1 = vld [vmem:[#allocation5 + $0x50] sm:$0xff]  ;;  %v990_v13 = vmov 0.0   ;;  %vm100_vm0 = vcmask 130048   ;;  %v412_v53 = vlaneseq }
  0x35   :  { %v86_v2 = vld [vmem:[#allocation5 + $0x38] sm:$0xff]  ;;  %138 = vmatprep.subr.mxu0 %v87_v0  ;;  %208 = vmatprep.subr.mxu1 %v89_v1  ;;  %v88_v3 = vld [vmem:[#allocation5 + $0x48] sm:$0xff]  ;;  %v73_v6 = vld [vmem:[#allocation2 + $0x8] sm:$0xff]  ;;  %vm991_vm1 = vmmov 0  }
  0x36   :  { %v80_v4 = vld [vmem:[#allocation5 + $0x8] sm:$0xff]  ;;  %v82_v5 = vld [vmem:[#allocation5 + $0x18] sm:$0xff]  ;;  %139 = vmatpush1.xpose.msra.mxu0 %v86_v2  ;;  %209 = vmatpush1.xpose.msra.mxu1 %v88_v3  ;;  %v79_v7 = vld [vmem:[#allocation5] sm:$0xff]  ;;  %v413_v54 = vshrl.u32 %v412_v53, 7 }
  0x37   :  { %140 = vmatprep.subr.mxu0 %v80_v4  ;;  %210 = vmatprep.subr.mxu1 %v82_v5  ;;  %v81_v8 = vld [vmem:[#allocation5 + $0x10] sm:$0xff]  ;;  %v75_v9 = vld [vmem:[#allocation2 + $0x18] sm:$0xff]  ;;  %v72_v11 = vld [vmem:[#allocation2] sm:$0xff] }
  0x38   :  { %174 = vmatprep.mubr.f32.mxu0 %v73_v6  ;;  %244 = vmatprep.mubr.f32.mxu1 %v75_v9  ;;  %v91_v10 = vld [vmem:[#allocation5 + $0x60] sm:$0xff]  ;;  %v74_v12 = vld [vmem:[#allocation2 + $0x10] sm:$0xff]  ;;  %v92_v15 = vld [vmem:[#allocation5 + $0x68] sm:$0xff]  ;;  %v414_v55 = vsub.s32 0, %v413_v54  ;;  %v422_v56 = vsub.s32 2, %v413_v54  ;;  %v418_v58 = vsub.s32 1, %v413_v54 }
  0x39   :  { %v90_v14 = vld [vmem:[#allocation5 + $0x58] sm:$0xff]  ;;  %v84_v16 = vld [vmem:[#allocation5 + $0x28] sm:$0xff]  ;;  %v77_v17 = vld [vmem:[#allocation2 + $0x28] sm:$0xff]  ;;  %v426_v59 = vsub.s32 3, %v413_v54  ;;  %v430_v62 = vsub.s32 4, %v413_v54  ;;  %v438_v63 = vsub.s32 6, %v413_v54 }
  0x3a   :  { %141 = vmatpush1.xpose.msra.mxu0 %v79_v7  ;;  %211 = vmatpush1.xpose.msra.mxu1 %v81_v8  ;;  %v83_v18 = vld [vmem:[#allocation5 + $0x20] sm:$0xff]  ;;  %v85_v19 = vld [vmem:[#allocation5 + $0x30] sm:$0xff]  ;;  %v76_v20 = vld [vmem:[#allocation2 + $0x20] sm:$0xff]  ;;  %v434_v4 = vsub.s32 5, %v413_v54 }
  0x3b   :  { %278 = vmatprep.subr.mxu0 %v91_v10  ;;  %821 = vmatprep.subr.mxu1 %v990_v13  ;;  %v78_v21 = vld [vmem:[#allocation2 + $0x30] sm:$0xff]  ;;  %v403_v23 = vld [vmem:[#allocation8 + $0x38] sm:$0xff]  ;;  %v406_v24 = vld [vmem:[#allocation8 + $0x50] sm:$0xff] }
  0x3c   :  { %v404_v22 = vld [vmem:[#allocation8 + $0x40] sm:$0xff]  ;;  %v397_v25 = vld [vmem:[#allocation8 + $0x8] sm:$0xff]  ;;  %v399_v28 = vld [vmem:[#allocation8 + $0x18] sm:$0xff] }
  0x3d   :  { %175 = vmatmul.mubr.f32.vlgmr.msra.gmra.mxu0 %v72_v11  ;;  %245 = vmatmul.mubr.f32.vlgmr.msra.gmra.mxu1 %v74_v12  ;;  %v405_v26 = vld [vmem:[#allocation8 + $0x48] sm:$0xff]  ;;  %v396_v27 = vld [vmem:[#allocation8] sm:$0xff]  ;;  %v398_v29 = vld [vmem:[#allocation8 + $0x10] sm:$0xff] }
  0x3e   :  { %279 = vmatpush1.xpose.msra.mxu0 %v90_v14  ;;  %822 = vmatpush3.xpose.msk.msra.mxu1 %vm100_vm0, %v92_v15  ;;  %v408_v30 = vld [vmem:[#allocation8 + $0x60] sm:$0xff]  ;;  %v799_v31 = vld [vmem:[#allocation7] ss:$0 sm:$0xff]  ;;  %v409_v48 = vld [vmem:[#allocation8 + $0x68] sm:$0xff] }
  0x3f   :  { %280 = vmatprep.subr.mxu0 %v84_v16  ;;  %823 = vmatprep.subr.mxu1 %v990_v13  ;;  %v407_v47 = vld [vmem:[#allocation8 + $0x58] sm:$0xff]  ;;  %v401_v50 = vld [vmem:[#allocation8 + $0x28] sm:$0xff]  ;;  %v400_v51 = vld [vmem:[#allocation8 + $0x20] sm:$0xff] }
  0x40   :  { %314 = vmatprep.mubr.f32.mxu0 %v77_v17  ;;  %825 = vmatprep.mubr.msk.f32.mxu1 %vm991_vm1, %v990_v13  ;;  %v402_v52 = vld [vmem:[#allocation8 + $0x30] sm:$0xff] }
  0x41   :  { %v410_v57 = vld [vmem:[%s1070_s4] sm:$0x7f]  ;;  %s992_s4 = smov [#allocation10]  }
  0x42   :  { %281 = vmatpush1.xpose.msra.mxu0 %v83_v18  ;;  %824 = vmatpush3.xpose.msk.msra.mxu1 %vm100_vm0, %v85_v19  ;;  %v415_v60 = vrot.slane %v410_v57, %v414_v55  ;;  %v423_v61 = vrot.slane %v410_v57, %v422_v56  ;;  %v419_v0 = vrot.slane %v410_v57, %v418_v58  ;;  %s788_s14 = sshll.u32 %s992_s4, 4  ;;  %s789_s14 = int_to_ptr.vmem [resolvable:$true] %s788_s14 }
  0x43   :  { %478 = vmatprep.subr.mxu0 %v404_v22  ;;  %549 = vmatprep.subr.mxu1 %v406_v24  ;;  %v427_v1 = vrot.slane %v410_v57, %v426_v59  ;;  %v431_v9 = vrot.slane %v410_v57, %v430_v62  ;;  %v439_v10 = vrot.slane %v410_v57, %v438_v63  ;;  %s956_s15 = scalar_lea.vmem %s789_s14, 896  ;;  %p961_p7 = scmp.lt.s32.totalorder %s789_s14, %s789_s14 }
  0x44   :  { %v435_v15 = vrot.slane %v410_v57, %v434_v4  ;;  %p957_p6 = scmp.ne.s32.totalorder %s789_s14, %s956_s15  ;;  %p962_p8 = scmp.lt.s32.totalorder %s956_s15, %s956_s15 }
  0x45   :  { %315 = vmatmul.mubr.f32.vlgmr.msra.gmra.mxu0 %v76_v20  ;;  %826 = vmatmul.mubr.msk.f32.vlgmr.msra.gmra.mxu1 %vm100_vm0, %v78_v21 }
  0x46   :  { %514 = vmatprep.mubr.f32.mxu0 %v990_v13  ;;  %585 = vmatprep.mubr.f32.mxu1 %v990_v13  ;;  %p963_p9 = por %p962_p8, %p961_p7 }
  0x47   :  { %479 = vmatpush1.msra.mxu0 %v403_v23  ;;  %550 = vmatpush1.msra.mxu1 %v405_v26 }
  0x48   :  { %480 = vmatprep.subr.mxu0 %v397_v25  ;;  %551 = vmatprep.subr.mxu1 %v399_v28  ;;  %p964_p10 = pnand %p963_p9, %p957_p6 }
  0x49   :  { %481 = vmatpush1.msra.mxu0 %v396_v27  ;;  %552 = vmatpush1.msra.mxu1 %v398_v29 }
  0x4a   :  { %620 = vmatprep.subr.mxu0 %v408_v30  ;;  %828 = vmatprep.subr.mxu1 %v990_v13 }
  0xfd   :  { %v176_v32 = vpop.f32.mrf.mxu0  ;;  %v246_v33 = vpop.f32.mrf.mxu1 }
  0xfe   :  { %v177_v36 = vadd.f32 %v799_v31, %v176_v32 }
  0xff   :  { %v178_v34 = vpop.f32.mrf.mxu0  ;;  %v248_v35 = vpop.f32.mrf.mxu1 }
 0x100   :  { %v247_v37 = vadd.f32 %v246_v33, %v177_v36 }
 0x105   :  { %v316_v38 = vpop.f32.mrf.mxu0  ;;  %v386_v39 = vpop.f32.mrf.mxu1 }
 0x106   :  { %v317_v40 = vadd.f32 %v316_v38, %v247_v37 }
 0x107   :  { %v318_v41 = vpop.f32.mrf.mxu0  ;;  %v827_v42 = vpop.f32.mrf.mxu1 }
 0x108   :  { %v387_v43 = vadd.f32 %v386_v39, %v317_v40 }
 0x10a   :  { %v803_v44 = vmul.f32 -1.442695, %v387_v43 }
 0x10c   :  { %844 = vpow2.f32 %v803_v44 }
 0x119   :  { %v845_v45 = vpop.eup %844 }
 0x11a   :  { %v393_v46 = vadd.f32 1.0, %v845_v45 }
 0x11c   :  { %846 = vrcp.f32 %v393_v46 }
 0x129   :  { %v847_v49 = vpop.eup %846 }
 0x12a   :  { %804 = vmatmul.mubr.msk.f32.vlgmr.msra.gmra.mxu0 %vm100_vm0, %v847_v49  ;;  %805 = vmatmul.mubr.msk.f32.vlgmr.msra.gmra.mxu1 %vm100_vm0, %v847_v49 }
 0x12b   :  { %621 = vmatpush1.msra.mxu0 %v407_v47  ;;  %829 = vmatpush3.msra.mxu1 %v409_v48 }
 0x12c   :  { %622 = vmatprep.subr.mxu0 %v401_v50  ;;  %830 = vmatprep.subr.mxu1 %v990_v13 }
 0x12d   :  { %623 = vmatpush1.msra.mxu0 %v400_v51  ;;  %656 = vmatprep.mubr.f32.mxu0 %v990_v13 }
 0x12e   :  { %831 = vmatpush3.msra.mxu1 %v402_v52  ;;  %832 = vmatprep.mubr.msk.f32.mxu1 %vm991_vm1, %v990_v13 }
 0x12f   :  { %806 = vmatmul.mubr.msk.f32.vlgmr.msra.gmra.mxu0 %vm100_vm0, %v847_v49  ;;  %833 = vmatmul.mubr.msk.f32.vlgmr.msra.gmra.mxu1 %vm100_vm0, %v847_v49 }
 0x1ea   :  { %v516_v2 = vpop.f32.mrf.mxu0  ;;  %v587_v3 = vpop.f32.mrf.mxu1 }
 0x1eb   :  { %v517_v5 = vadd.f32 %v516_v2, %v415_v60  ;;  %v588_v6 = vadd.f32 %v587_v3, %v423_v61 }
 0x1ec   :  { %v518_v7 = vpop.f32.mrf.mxu0  ;;  %v589_v8 = vpop.f32.mrf.mxu1 }
 0x1ed   :  { %v808_v11 = vmul.f32 -1.442695, %v517_v5  ;;  %v810_v12 = vmul.f32 -1.442695, %v588_v6  ;;  %v519_v13 = vadd.f32 %v518_v7, %v419_v0  ;;  %v590_v14 = vadd.f32 %v589_v8, %v427_v1 }
 0x1ef   :  { %848 = vpow2.f32 %v808_v11  ;;  %v809_v16 = vmul.f32 -1.442695, %v519_v13  ;;  %v811_v17 = vmul.f32 -1.442695, %v590_v14  ;;  %v658_v18 = vpop.f32.mrf.mxu0  ;;  %v729_v19 = vpop.f32.mrf.mxu1 }
 0x1f0   :  { %850 = vpow2.f32 %v810_v12  ;;  %v659_v20 = vadd.f32 %v658_v18, %v431_v9  ;;  %v730_v21 = vadd.f32 %v729_v19, %v439_v10 }
 0x1f1   :  { %852 = vpow2.f32 %v809_v16  ;;  %v660_v22 = vpop.f32.mrf.mxu0  ;;  %v834_v23 = vpop.f32.mrf.mxu1 }
 0x1f2   :  { %854 = vpow2.f32 %v811_v17  ;;  %v812_v24 = vmul.f32 -1.442695, %v659_v20  ;;  %v814_v25 = vmul.f32 -1.442695, %v730_v21  ;;  %v661_v26 = vadd.f32 %v660_v22, %v435_v15 }
 0x1f4   :  { %856 = vpow2.f32 %v812_v24  ;;  %v813_v27 = vmul.f32 -1.442695, %v661_v26 }
 0x1f5   :  { %858 = vpow2.f32 %v814_v25 }
 0x1f6   :  { %860 = vpow2.f32 %v813_v27 }
 0x1fc   :  { %v849_v28 = vpop.eup %848 }
 0x1fd   :  { %v851_v29 = vpop.eup %850  ;;  %v754_v30 = vadd.f32 1.0, %v849_v28 }
 0x1fe   :  { %v853_v31 = vpop.eup %852  ;;  %v756_v32 = vadd.f32 1.0, %v851_v29 }
 0x1ff   :  { %v855_v33 = vpop.eup %854  ;;  %862 = vrcp.f32 %v754_v30  ;;  %v755_v34 = vadd.f32 1.0, %v853_v31 }
 0x200   :  { %864 = vrcp.f32 %v756_v32  ;;  %v757_v35 = vadd.f32 1.0, %v855_v33 }
 0x201   :  { %v857_v36 = vpop.eup %856  ;;  %866 = vrcp.f32 %v755_v34 }
 0x202   :  { %v859_v37 = vpop.eup %858  ;;  %868 = vrcp.f32 %v757_v35  ;;  %v758_v38 = vadd.f32 1.0, %v857_v36 }
 0x203   :  { %v861_v39 = vpop.eup %860  ;;  %v760_v40 = vadd.f32 1.0, %v859_v37 }
 0x204   :  { %870 = vrcp.f32 %v758_v38  ;;  %v759_v41 = vadd.f32 1.0, %v861_v39 }
 0x205   :  { %872 = vrcp.f32 %v760_v40 }
 0x206   :  { %874 = vrcp.f32 %v759_v41 }
 0x20c   :  { %v863_v42 = vpop.eup %862 }
 0x20d   :  { %v865_v43 = vpop.eup %864  ;;  %775 = vst [vmem:[#allocation10] sm:$0xff] %v863_v42 }
 0x20e   :  { %v867_v44 = vpop.eup %866  ;;  %777 = vst [vmem:[#allocation10 + $0x10] sm:$0xff] %v865_v43 }
 0x20f   :  { %v869_v45 = vpop.eup %868  ;;  %776 = vst [vmem:[#allocation10 + $0x8] sm:$0xff] %v867_v44 }
 0x210   :  { %778 = vst [vmem:[#allocation10 + $0x18] sm:$0xff] %v869_v45 }
 0x211   :  { %v871_v46 = vpop.eup %870 }
 0x212   :  { %v873_v47 = vpop.eup %872  ;;  %779 = vst [vmem:[#allocation10 + $0x20] sm:$0xff] %v871_v46 }
 0x213   :  { %v875_v48 = vpop.eup %874  ;;  %781 = vst.msk [vmem:[#allocation10 + $0x30] sm:$0xff] %vm100_vm0, %v873_v47 }
 0x214   :  { %780 = vst [vmem:[#allocation10 + $0x28] sm:$0xff] %v875_v48 }
 0x215   :  { %967 = shalt.err (!%p964_p10)
}
 0x216   :  { %791 = dma.vmem_to_hbm [thread:$0]  %s789_s14, 896, %s1071_s5, [#allocation4]  }
 0x217   :  { %982 = dma.done.wait [#allocation4], 896  }
 0x218   :  { %983 = vsyncadd [#allocation4], 4294966400 }
 0x219   :  { %795 = vsyncpa [#allocation3], 1 }
 0x21a   :  { %796 = vsyncpa [#allocation6], 1 }
 0x21b   :  { %797 = vsyncpa [#allocation9], 1 }
 0x21c   :  { %798 = vsyncpa [#allocation4], 1 }

</bundles_post_ra>
